<compile_context>
chip_gen: v5e
topology: v5e:2x2
jax: 0.10.0
libtpu: 0.0.40
codegen_flags: <defaults>
</compile_context>

<pallas_src>
import functools
import math

import numpy as np
import jax
import jax.numpy as jnp
from jax import lax
from jax.experimental import pallas as pl
from jax.experimental.pallas import tpu as pltpu


def _tokens_major_kernel(e_tile, x_ref, w_ref, b_ref, o_ref):
    """flatten=True: one (batch, E-tile) step -> (P, e_tile) block, lane-dense over E.

    x_ref: (Cin, P)      bf16  native channels-major activations (no wrapper transpose)
    w_ref: (E, Cin)      bf16  full torch-layout conv weight, grid-invariant (resident)
    b_ref: (1, e_tile)   f32   bias tile
    o_ref: (P, e_tile)         output tile
    """
    e0 = pl.program_id(1) * e_tile
    if e_tile % 128 == 0:           # static branch; hint aligned sublane slice start
        e0 = pl.multiple_of(e0, 128)
    w = w_ref[pl.ds(e0, e_tile), :]                               # (e_tile, Cin)
    # Contract over Cin (dim 0 of x, dim 1 of w): LHS-transposed matmul, MXU handles it.
    y = lax.dot_general(x_ref[...], w, (((0,), (1,)), ((), ())),
                        preferred_element_type=jnp.float32)        # (P, e_tile) f32
    o_ref[...] = (y + b_ref[...]).astype(o_ref.dtype)


def _channels_major_kernel(e_tile, x_ref, w_ref, b_ref, o_ref):
    """flatten=False: write (e_tile, P) blocks directly so no post-kernel transpose.

    x_ref: (Cin, P) bf16, w_ref: (E, Cin) bf16, b_ref: (e_tile, 1) f32, o_ref: (e_tile, P)
    """
    e0 = pl.program_id(1) * e_tile
    if e_tile % 128 == 0:
        e0 = pl.multiple_of(e0, 128)
    w = w_ref[pl.ds(e0, e_tile), :]                               # (e_tile, Cin)
    y = lax.dot_general(w, x_ref[...], (((1,), (0,)), ((), ())),
                        preferred_element_type=jnp.float32)        # (e_tile, P) f32
    o_ref[...] = (y + b_ref[...]).astype(o_ref.dtype)


def _pick_e_tile(E):
    # Prefer >=2 lane-dense tiles so the grid has >=2 steps even at batch 1
    # (megacore + pipelining); otherwise the largest legal lane-dense tile.
    for t in (512, 256, 128):
        if E % t == 0 and E // t >= 2:
            return t
    for t in (512, 256, 128):
        if E % t == 0:
            return t
    return E  # full-extent block is always legal


def pretrained_tokenizer_head(feat, conv_weight, conv_bias, *, n_features,
                              flatten=False, out_dtype=jnp.float32):
    """Post-backbone part of PretrainedTokenizer.forward.

    feat:        (B, n_features * width * width)  backbone output (resnet50's flatten),
                 channels-major; f32 or bf16 (bf16 preferred: halves the activation DMA).
    conv_weight: (embedding_dim, n_features)      torch Conv2d weight with the 1x1 squeezed.
    conv_bias:   (embedding_dim,)
    """
    B, L = feat.shape
    width = int(math.isqrt(L // n_features))
    assert n_features * width * width == L, "feature length inconsistent with n_features"
    P = width * width
    Cin = n_features
    E = conv_weight.shape[0]

    # Native channels-major layout: this reshape is a free view (no HBM transpose pass).
    x = feat.reshape(B, Cin, P)
    if x.dtype != jnp.bfloat16:
        x = x.astype(jnp.bfloat16)          # ideally the frozen backbone emits bf16 itself
    w_bf = conv_weight.astype(jnp.bfloat16)  # (E, Cin), torch layout kept (no transpose)

    e_tile = _pick_e_tile(E)
    ne = E // e_tile
    grid = (B, ne)

    out_itemsize = int(np.dtype(out_dtype).itemsize)
    cost = pl.CostEstimate(
        flops=2 * B * P * Cin * E,
        transcendentals=0,
        bytes_accessed=(B * Cin * P * 2) + (E * Cin * 2) + (E * 4)
                       + (B * P * E * out_itemsize),
    )
    cparams = pltpu.CompilerParams(dimension_semantics=("parallel", "parallel"))

    # Common specs: x is constant over the inner E-tile axis (DMA'd once per batch);
    # the full weight has a constant index_map (DMA'd once, VMEM-resident).
    x_spec = pl.BlockSpec((None, Cin, P), lambda bi, ej: (bi, 0, 0))
    w_spec = pl.BlockSpec((E, Cin), lambda bi, ej: (0, 0))

    if flatten:
        # == Conv2d(...).flatten(-2, -1).transpose(-2, -1)  -> (B, P, E)
        b = conv_bias.astype(jnp.float32).reshape(ne, 1, e_tile)
        out = pl.pallas_call(
            functools.partial(_tokens_major_kernel, e_tile),
            out_shape=jax.ShapeDtypeStruct((B, P, E), out_dtype),
            grid=grid,
            in_specs=[
                x_spec,
                w_spec,
                pl.BlockSpec((None, 1, e_tile), lambda bi, ej: (ej, 0, 0)),
            ],
            out_specs=pl.BlockSpec((None, P, e_tile), lambda bi, ej: (bi, 0, ej)),
            compiler_params=cparams,
            cost_estimate=cost,
        )(x, w_bf, b)
        return out

    # == Conv2d(...) output in NCHW: kernel writes (E_tile, P) blocks directly,
    # final reshape (B, E, P) -> (B, E, w, w) is a pure view (no data movement).
    b = conv_bias.astype(jnp.float32).reshape(ne, e_tile, 1)
    out = pl.pallas_call(
        functools.partial(_channels_major_kernel, e_tile),
        out_shape=jax.ShapeDtypeStruct((B, E, P), out_dtype),
        grid=grid,
        in_specs=[
            x_spec,
            w_spec,
            pl.BlockSpec((None, e_tile, 1), lambda bi, ej: (ej, 0, 0)),
        ],
        out_specs=pl.BlockSpec((None, e_tile, P), lambda bi, ej: (bi, ej, 0)),
        compiler_params=cparams,
        cost_estimate=cost,
    )(x, w_bf, b)
    return out.reshape(B, E, width, width)


def reference_head(feat, conv_weight, conv_bias, *, n_features, flatten=False,
                   cast_bf16=False):
    """Pure-JAX reference of the same post-backbone forward."""
    B, L = feat.shape
    width = int(math.isqrt(L // n_features))
    x = feat.astype(jnp.float32).reshape(B, n_features, width, width)
    w = conv_weight
    if cast_bf16:  # mirror the kernel's bf16 MXU operands (f32 accumulation)
        x = x.astype(jnp.bfloat16).astype(jnp.float32)
        w = w.astype(jnp.bfloat16).astype(jnp.float32)
    y = jnp.einsum("bchw,ec->behw", x, w) + conv_bias[None, :, None, None]
    if flatten:
        return jnp.transpose(y.reshape(B, -1, width * width), (0, 2, 1))
    return y


if __name__ == "__main__":
    # Small stand-ins for the real sizes (n_features=2048, embedding_dim=768, width=14).
    B = 2
    n_features = 256
    embedding_dim = 256   # multiple of 128 -> two lane-dense E tiles (grid (2, 2))
    width = 8             # 8x8 = 64 tokens

    key = jax.random.PRNGKey(0)
    k_feat, k_w, k_b = jax.random.split(key, 3)
    # Simulated backbone output, in exactly the flattened channels-major layout resnet50
    # produces once avgpool/fc are identities; emitted in bf16 (frozen backbone can).
    feat = jax.random.normal(
        k_feat, (B, n_features * width * width), jnp.float32).astype(jnp.bfloat16)
    conv_w = 0.05 * jax.random.normal(k_w, (embedding_dim, n_features), jnp.float32)
    conv_b = 0.05 * jax.random.normal(k_b, (embedding_dim,), jnp.float32)

    ok = True
    for flatten in (False, True):
        out = pretrained_tokenizer_head(
            feat, conv_w, conv_b, n_features=n_features, flatten=flatten)
        out = jax.block_until_ready(out)

        exp_shape = ((B, width * width, embedding_dim) if flatten
                     else (B, embedding_dim, width, width))
        ok &= (out.shape == exp_shape)

        # Tight check vs a precision-matched (bf16 operand) reference ...
        ref_bf16 = reference_head(feat, conv_w, conv_b, n_features=n_features,
                                  flatten=flatten, cast_bf16=True)
        ok &= bool(jnp.allclose(out, ref_bf16, atol=2e-3, rtol=2e-3))
        # ... and a looser sanity check vs the f32-weight reference.
        ref_f32 = reference_head(feat, conv_w, conv_b, n_features=n_features,
                                 flatten=flatten, cast_bf16=False)
        ok &= bool(jnp.allclose(out, ref_f32, atol=5e-2, rtol=5e-2))

    # bf16-output path (v6e store-traffic optimization), loose check only.
    out_bf16 = jax.block_until_ready(pretrained_tokenizer_head(
        feat, conv_w, conv_b, n_features=n_features, flatten=True,
        out_dtype=jnp.bfloat16))
    ref = reference_head(feat, conv_w, conv_b, n_features=n_features,
                         flatten=True, cast_bf16=True)
    ok &= (out_bf16.shape == (B, width * width, embedding_dim))
    ok &= bool(jnp.allclose(out_bf16.astype(jnp.float32), ref, atol=2e-2, rtol=2e-2))

    assert ok, "mismatch vs JAX reference"
    print("KERNEL_OK")
</pallas_src>

<mosaic_0001>
module attributes {stable_mosaic.version = 11 : i64} {
  func.func @_channels_major_kernel(%arg0: i32, %arg1: i32, %arg2: memref<1x256x64xbf16, #tpu.memory_space<vmem>>, %arg3: memref<256x256xbf16, #tpu.memory_space<vmem>>, %arg4: memref<1x128x1xf32, #tpu.memory_space<vmem>>, %arg5: memref<1x128x64xf32, #tpu.memory_space<vmem>>) attributes {dimension_semantics = [#tpu.dimension_semantics<parallel>, #tpu.dimension_semantics<parallel>], iteration_bounds = array<i64: 2, 2>, scalar_prefetch = 0 : i64, scratch_operands = 0 : i64, tpu.core_type = #tpu.core_type<tc>, window_params = [{transform_indices = @transform_0, window_bounds = array<i64: 1, 256, 64>}, {pipeline_mode = #tpu.pipeline_mode<synchronous>, transform_indices = @transform_1, window_bounds = array<i64: 256, 256>}, {transform_indices = @transform_2, window_bounds = array<i64: 1, 128, 1>}, {transform_indices = @transform_3, window_bounds = array<i64: 1, 128, 64>}]} {
    %c128_i32 = arith.constant 128 : i32
    %0 = arith.muli %arg1, %c128_i32 : i32
    %1 = tpu.assume_multiple %0, 128 : i32
    %2 = arith.index_cast %1 : i32 to index
    %c0 = arith.constant 0 : index
    %3 = vector.load %arg3[%2, %c0] : memref<256x256xbf16, #tpu.memory_space<vmem>>, vector<128x256xbf16>
    %c0_0 = arith.constant 0 : index
    %c0_1 = arith.constant 0 : index
    %c0_2 = arith.constant 0 : index
    %4 = vector.load %arg2[%c0_0, %c0_1, %c0_2] : memref<1x256x64xbf16, #tpu.memory_space<vmem>>, vector<1x256x64xbf16>
    %5 = vector.shape_cast %4 : vector<1x256x64xbf16> to vector<256x64xbf16>
    %cst = arith.constant dense<0.000000e+00> : vector<128x64xf32>
    %6 = tpu.matmul %3, %5, %cst {dimension_numbers = #tpu.dot_dimension_numbers<[1], [0], [0], [1], [0, 0, 1, 1], [], []>} : vector<128x256xbf16>, vector<256x64xbf16>, vector<128x64xf32> -> vector<128x64xf32>
    %c0_3 = arith.constant 0 : index
    %c0_4 = arith.constant 0 : index
    %c0_5 = arith.constant 0 : index
    %7 = vector.load %arg4[%c0_3, %c0_4, %c0_5] : memref<1x128x1xf32, #tpu.memory_space<vmem>>, vector<1x128x1xf32>
    %8 = vector.shape_cast %7 : vector<1x128x1xf32> to vector<128x1xf32>
    %9 = vector.broadcast %8 : vector<128x1xf32> to vector<128x64xf32>
    %10 = arith.addf %6, %9 : vector<128x64xf32>
    %c0_6 = arith.constant 0 : index
    %c0_7 = arith.constant 0 : index
    %c0_8 = arith.constant 0 : index
    %11 = vector.load %arg5[%c0_6, %c0_7, %c0_8] : memref<1x128x64xf32, #tpu.memory_space<vmem>>, vector<1x128x64xf32>
    %12 = vector.shape_cast %11 : vector<1x128x64xf32> to vector<128x64xf32>
    %13 = vector.shape_cast %10 : vector<128x64xf32> to vector<1x128x64xf32>
    tpu.vector_store %arg5[%c0_6, %c0_7, %c0_8], %13 {strides = array<i32>} : memref<1x128x64xf32, #tpu.memory_space<vmem>>, vector<1x128x64xf32>,
    return
  }
  func.func @transform_0(%arg0: i32, %arg1: i32) -> (i32, i32, i32) {
    %c0_i32 = arith.constant 0 : i32
    %c0_i32_0 = arith.constant 0 : i32
    %c0_i32_1 = arith.constant 0 : i32
    return %arg0, %c0_i32, %c0_i32_0 : i32, i32, i32
  }
  func.func @transform_1(%arg0: i32, %arg1: i32) -> (i32, i32) {
    %c0_i32 = arith.constant 0 : i32
    %c0_i32_0 = arith.constant 0 : i32
    %c0_i32_1 = arith.constant 0 : i32
    return %c0_i32, %c0_i32_0 : i32, i32
  }
  func.func @transform_2(%arg0: i32, %arg1: i32) -> (i32, i32, i32) {
    %c0_i32 = arith.constant 0 : i32
    %c0_i32_0 = arith.constant 0 : i32
    %c0_i32_1 = arith.constant 0 : i32
    return %arg1, %c0_i32, %c0_i32_0 : i32, i32, i32
  }
  func.func @transform_3(%arg0: i32, %arg1: i32) -> (i32, i32, i32) {
    %c0_i32 = arith.constant 0 : i32
    %c0_i32_0 = arith.constant 0 : i32
    return %arg0, %arg1, %c0_i32 : i32, i32, i32
  }
}

</mosaic_0001>

<bundles_post_ra>
// kernel: tpu_custom_call.1
= control target key start
LH: loop header
LB: loop body
LE: loop exit
PB: predicated region body
PF: predicated region fallthrough
CT: control target
= control target key end

     0   :  { %s1054_s12 = smov 0   ;;  %s1056_s13 = smov 0   ;;  %s1234_s0 = inlined_call_operand.vmem [shape: bf16[2,256,64], index: 0, kind: input, shape index: {}]   ;;  %s1235_s1 = inlined_call_operand.vmem [shape: bf16[256,256], index: 1, kind: input, shape index: {}]   ;;  %s1236_s2 = inlined_call_operand.vmem [shape: f32[2,128,1], index: 2, kind: input, shape index: {}]   ;;  %s1237_s3 = inlined_call_operand.vmem [shape: f32[2,256,64], index: 3, kind: output, shape index: {}]  }
   0x1   :  { %s1058_s14 = smov 0   ;;  %s1060_s15 = smov 0  }
   0x2   :  { %s1062_s16 = smov 0  }
   0x3 LB: > { %s22_s17 = sadd.s32 1, %s1023_s14  ;;  %s25_s18 = sadd.s32 1, %s1027_s15  ;;  %s1031_s16 = sphi %s1062_s16, %s13_s16   ;;  %s1027_s15 = sphi %s1060_s15, %s1241_s15   ;;  %s1023_s14 = sphi %s1058_s14, %s1240_s14   ;;  %s1019_s13 = sphi %s1056_s13, %s1239_s13   ;;  %s1015_s12 = sphi %s1054_s12, %s1238_s12  }
   0x4   : > { %p23_p0 = scmp.ge.s32.totalorder %s22_s17, 2  ;;  %p757_p1 = scmp.ge.s32.totalorder %s1031_s16, 1 }
   0x5   : > { %p161_p2 = scmp.lt.s32.totalorder %s1031_s16, 5 }
   0x6   : > { %s1243_s17 = smov (%p23_p0, %s22_s17), 0  ;;  %s1245_s18 = smov (!%p23_p0, %s25_s18), %s1027_s15 }
   0x7   : > { %p162_p3 = pnand %p757_p1, %p161_p2  ;;  %p27_p4 = scmp.ge.s32.totalorder %s1245_s18, 2 }
   0x8   : > { %p194_p5 = scmp.lt.s32.totalorder (!%p162_p3), %s1019_s13, 1  ;;  %p199_p6 = scmp.lt.s32.totalorder (!%p162_p3), %s1015_s12, 1 }
   0x9   : > { %s1247_s18 = smov (%p27_p4, %s1245_s18), 0  ;;  %165 = sbr.rel (%p162_p3) target bundleno = 243 (0xf3), region = 32 }
   0xa   : > { %s765_s28 = sshll.u32 (!%p162_p3), %s1015_s12, 7  ;;  %s762_s5 = sshll.u32 (!%p162_p3), %s1015_s12, 4 }
   0xb   : > { %s1123_s4 = scalar_lea.vmem (!%p162_p3), %s1235_s1, %s765_s28  ;;  %p207_p7 = scmp.lt.s32.totalorder (!%p162_p3), %s762_s5, 31 }
   0xe   : > { %v1033_v0 = vmov 0   ;;  %s1249_s13 = smov (!%p194_p5, %s1019_s13), 1  ;;  %v770_v22 = vld [vmem:[%s1123_s4] sm:$0xf]  ;;  %v902_v23 = vld [vmem:[%s1123_s4 + $0x4] sm:$0xf0] }
   0xf   : > { %990 = vset.pattern.permute.xlu0 %v1033_v0  ;;  %991 = vset.pattern.permute.xlu1 %v1033_v0  ;;  %s200_s19 = scalar_select %p199_p6, %s1015_s12, 1  ;;  %v802_v25 = vld [vmem:[%s1123_s4 + $0x40] sm:$0xf]  ;;  %v910_v27 = vld [vmem:[%s1123_s4 + $0x44] sm:$0xf0]  ;;  %v771_v33 = vor.u32 %v902_v23, %v770_v22  ;;  %vm638_vm0 = vcmask 523264  }
  0x10   : > { %992 = vset.pattern.permute.xlu2 %v1033_v0  ;;  %s898_s20 = sshll.u32 %s1249_s13, 7  ;;  %v901_v28 = vld [vmem:[%s1123_s4 + $0x4] sm:$0xf]  ;;  %v772_v30 = vld [vmem:[%s1123_s4 + $0x8] sm:$0xf0]  ;;  %v803_v34 = vor.u32 %v910_v27, %v802_v25  ;;  %s1251_s5 = smov (!%p207_p7, %s762_s5), 31 }
  0x11   : > { %s1094_s23 = scalar_lea.vmem %s1234_s0, %s898_s20  ;;  %s899_s24 = sshll.u32 %s200_s19, 7  ;;  %v909_v31 = vld [vmem:[%s1123_s4 + $0x44] sm:$0xf]  ;;  %v804_v32 = vld [vmem:[%s1123_s4 + $0x48] sm:$0xf0]  ;;  %v775_v35 = vor.u32 %v901_v28, %v772_v30 }
  0x12   : > { %v924_v1 = vld [vmem:[%s1094_s23 + $0x38] sm:$0xff]  ;;  %s1101_s27 = scalar_lea.vmem %s1236_s2, %s899_s24  ;;  %v923_v3 = vld [vmem:[%s1094_s23 + $0x30] sm:$0xff]  ;;  %v922_v6 = vld [vmem:[%s1094_s23 + $0x28] sm:$0xff]  ;;  %v807_v36 = vor.u32 %v909_v31, %v804_v32  ;;  %s763_s6 = sshll.u32 %s1249_s13, 5 }
  0x13   : > { %v932_v2 = vld [vmem:[%s1094_s23 + $0x78] sm:$0xff]  ;;  %540 = vmatpush.bf16.msra.mxu0 %v924_v1  ;;  %933 = vmatpush.bf16.msra.mxu2 %v924_v1  ;;  %v931_v4 = vld [vmem:[%s1094_s23 + $0x70] sm:$0xff]  ;;  %v268_v5 = vld [vmem:[%s1101_s27] sm:$0xff]  ;;  %s210_s7 = sadd.s32 %s763_s6, %s1251_s5 }
  0x14   : > { %589 = vmatpush.bf16.msra.mxu1 %v932_v2  ;;  %941 = vmatpush.bf16.msra.mxu3 %v932_v2  ;;  %v930_v7 = vld [vmem:[%s1094_s23 + $0x68] sm:$0xff]  ;;  %v270_v8 = vld [vmem:[%s1101_s27 + $0x10] sm:$0xff]  ;;  %v921_v9 = vld [vmem:[%s1094_s23 + $0x20] sm:$0xff]  ;;  %s764_s8 = sshll.u32 %s210_s7, 3 }
  0x15   : > { %286 = vperm.xlu0 %990, %v268_v5   ;;  %296 = vperm.xlu1 %991, %v270_v8   ;;  %v269_v10 = vld [vmem:[%s1101_s27 + $0x8] sm:$0xff]  ;;  %v929_v11 = vld [vmem:[%s1094_s23 + $0x60] sm:$0xff]  ;;  %v920_v12 = vld [vmem:[%s1094_s23 + $0x18] sm:$0xff]  ;;  %s1178_s11 = scalar_lea.vmem %s1237_s3, %s764_s8 }
  0x16   : > { %v928_v13 = vld [vmem:[%s1094_s23 + $0x58] sm:$0xff]  ;;  %v919_v14 = vld [vmem:[%s1094_s23 + $0x10] sm:$0xff]  ;;  %v272_v17 = vld [vmem:[%s1101_s27 + $0x20] sm:$0xff] }
  0x17   : > { %541 = vmatpush.bf16.msra.mxu0 %v923_v3  ;;  %934 = vmatpush.bf16.msra.mxu2 %v923_v3  ;;  %v274_v15 = vld [vmem:[%s1101_s27 + $0x30] sm:$0xff]  ;;  %v271_v16 = vld [vmem:[%s1101_s27 + $0x18] sm:$0xff]  ;;  %v918_v19 = vld [vmem:[%s1094_s23 + $0x8] sm:$0xff] }
  0x18   : > { %590 = vmatpush.bf16.msra.mxu1 %v931_v4  ;;  %942 = vmatpush.bf16.msra.mxu3 %v931_v4  ;;  %v927_v18 = vld [vmem:[%s1094_s23 + $0x50] sm:$0xff]  ;;  %v926_v20 = vld [vmem:[%s1094_s23 + $0x48] sm:$0xff]  ;;  %v917_v21 = vld [vmem:[%s1094_s23] sm:$0xff] }
  0x19   : > { %306 = vperm.xlu2 %992, %v272_v17   ;;  %v925_v24 = vld [vmem:[%s1094_s23 + $0x40] sm:$0xff]  ;;  %v275_v26 = vld [vmem:[%s1101_s27 + $0x38] sm:$0xff]  ;;  %v277_v29 = vld [vmem:[%s1101_s27 + $0x48] sm:$0xff] }
  0x1a   : > { %v280_v37 = vld [vmem:[%s1101_s27 + $0x60] sm:$0xff]  ;;  %v273_v38 = vld [vmem:[%s1101_s27 + $0x28] sm:$0xff]  ;;  %v278_v39 = vld [vmem:[%s1101_s27 + $0x50] sm:$0xff] }
  0x1b   : > { %542 = vmatpush.bf16.msra.mxu0 %v922_v6  ;;  %935 = vmatpush.bf16.msra.mxu2 %v922_v6  ;;  %v778_v40 = vld [vmem:[%s1123_s4 + $0x10] sm:$0xf]  ;;  %v276_v41 = vld [vmem:[%s1101_s27 + $0x40] sm:$0xff]  ;;  %v904_v42 = vld [vmem:[%s1123_s4 + $0x14] sm:$0xf0] }
  0x1c   : > { %591 = vmatpush.bf16.msra.mxu1 %v930_v7  ;;  %943 = vmatpush.bf16.msra.mxu3 %v930_v7  ;;  %v810_v43 = vld [vmem:[%s1123_s4 + $0x50] sm:$0xf]  ;;  %v281_v44 = vld [vmem:[%s1101_s27 + $0x68] sm:$0xff]  ;;  %v912_v45 = vld [vmem:[%s1123_s4 + $0x54] sm:$0xf0]  ;;  %v779_v51 = vor.u32 %v904_v42, %v778_v40 }
  0x1d   : > { %291 = vperm.xlu0 %990, %v269_v10   ;;  %301 = vperm.xlu1 %991, %v271_v16   ;;  %v903_v46 = vld [vmem:[%s1123_s4 + $0x14] sm:$0xf]  ;;  %v283_v47 = vld [vmem:[%s1101_s27 + $0x78] sm:$0xff]  ;;  %v811_v52 = vor.u32 %v912_v45, %v810_v43  ;;  %v786_v57 = vld [vmem:[%s1123_s4 + $0x20] sm:$0xf] }
  0x1e   : > { %v780_v48 = vld [vmem:[%s1123_s4 + $0x18] sm:$0xf0]  ;;  %v911_v49 = vld [vmem:[%s1123_s4 + $0x54] sm:$0xf]  ;;  %v906_v58 = vld [vmem:[%s1123_s4 + $0x24] sm:$0xf0] }
  0x1f   : > { %543 = vmatpush.bf16.msra.mxu0 %v921_v9  ;;  %936 = vmatpush.bf16.msra.mxu2 %v921_v9  ;;  %v812_v50 = vld [vmem:[%s1123_s4 + $0x58] sm:$0xf0]  ;;  %v783_v53 = vor.u32 %v903_v46, %v780_v48  ;;  %v282_v56 = vld [vmem:[%s1101_s27 + $0x70] sm:$0xff]  ;;  %v818_v59 = vld [vmem:[%s1123_s4 + $0x60] sm:$0xf]  ;;  %v787_v1 = vor.u32 %v906_v58, %v786_v57 }
  0x20   : > { %592 = vmatpush.bf16.msra.mxu1 %v929_v11  ;;  %944 = vmatpush.bf16.msra.mxu3 %v929_v11  ;;  %v815_v54 = vor.u32 %v911_v49, %v812_v50  ;;  %v279_v55 = vld [vmem:[%s1101_s27 + $0x58] sm:$0xff]  ;;  %v914_v60 = vld [vmem:[%s1123_s4 + $0x64] sm:$0xf0]  ;;  %v905_v61 = vld [vmem:[%s1123_s4 + $0x24] sm:$0xf] }
  0x21   : > { %311 = vperm.xlu2 %992, %v273_v38   ;;  %v788_v62 = vld [vmem:[%s1123_s4 + $0x28] sm:$0xf0]  ;;  %v913_v63 = vld [vmem:[%s1123_s4 + $0x64] sm:$0xf]  ;;  %v819_v2 = vor.u32 %v914_v60, %v818_v59  ;;  %v794_v5 = vld [vmem:[%s1123_s4 + $0x30] sm:$0xf] }
  0x22   : > { %v820_v0 = vld [vmem:[%s1123_s4 + $0x68] sm:$0xf0]  ;;  %v791_v3 = vor.u32 %v905_v61, %v788_v62  ;;  %v908_v6 = vld [vmem:[%s1123_s4 + $0x34] sm:$0xf0]  ;;  %v826_v7 = vld [vmem:[%s1123_s4 + $0x70] sm:$0xf] }
  0x23   : > { %544 = vmatpush.bf16.msra.mxu0 %v920_v12  ;;  %937 = vmatpush.bf16.msra.mxu2 %v920_v12  ;;  %v823_v4 = vor.u32 %v913_v63, %v820_v0  ;;  %v916_v8 = vld [vmem:[%s1123_s4 + $0x74] sm:$0xf0]  ;;  %v907_v9 = vld [vmem:[%s1123_s4 + $0x34] sm:$0xf]  ;;  %v796_v10 = vld [vmem:[%s1123_s4 + $0x38] sm:$0xf0] }
  0x24   : > { %593 = vmatpush.bf16.msra.mxu1 %v928_v13  ;;  %945 = vmatpush.bf16.msra.mxu3 %v928_v13  ;;  %v915_v11 = vld [vmem:[%s1123_s4 + $0x74] sm:$0xf]  ;;  %v828_v12 = vld [vmem:[%s1123_s4 + $0x78] sm:$0xf0]  ;;  %v795_v13 = vor.u32 %v908_v6, %v794_v5 }
  0x25   : > { %316 = vperm.xlu0 %990, %v274_v15   ;;  %321 = vperm.xlu1 %991, %v275_v26   ;;  %v799_v15 = vor.u32 %v907_v9, %v796_v10  ;;  %v831_v16 = vor.u32 %v915_v11, %v828_v12 }
  0x27   : > { %545 = vmatpush.bf16.msra.mxu0 %v919_v14  ;;  %938 = vmatpush.bf16.msra.mxu2 %v919_v14  ;;  %v827_v14 = vor.u32 %v916_v8, %v826_v7 }
  0x28   : > { %594 = vmatpush.bf16.msra.mxu1 %v927_v18  ;;  %946 = vmatpush.bf16.msra.mxu3 %v927_v18 }
  0x29   : > { %326 = vperm.xlu2 %992, %v276_v41  }
  0x2b   : > { %546 = vmatpush.bf16.msra.mxu0 %v918_v19  ;;  %939 = vmatpush.bf16.msra.mxu2 %v918_v19 }
  0x2c   : > { %595 = vmatpush.bf16.msra.mxu1 %v926_v20  ;;  %947 = vmatpush.bf16.msra.mxu3 %v926_v20 }
  0x2d   : > { %331 = vperm.xlu0 %990, %v277_v29   ;;  %336 = vperm.xlu1 %991, %v278_v39  }
  0x2f   : > { %547 = vmatpush.bf16.msra.mxu0 %v917_v21  ;;  %940 = vmatpush.bf16.msra.mxu2 %v917_v21 }
  0x30   : > { %596 = vmatpush.bf16.msra.mxu1 %v925_v24  ;;  %948 = vmatpush.bf16.msra.mxu3 %v925_v24 }
  0x31   : > { %341 = vperm.xlu2 %992, %v279_v55  }
  0x32   : > { %548 = vmatmul.bf16.vlgmr.msra.gmra.mxu0 %v771_v33  ;;  %568 = vmatmul.bf16.vlgmr.msra.gmra.mxu2 %v803_v34 }
  0x33   : > { %597 = vmatmul.bf16.vlgmr.msra.gmra.mxu1 %v775_v35  ;;  %617 = vmatmul.bf16.vlgmr.msra.gmra.mxu3 %v807_v36 }
  0x35   : > { %346 = vperm.xlu0 %990, %v280_v37   ;;  %351 = vperm.xlu1 %991, %v281_v44  }
  0x39   : > { %356 = vperm.xlu2 %992, %v282_v56  }
  0x3d   : > { %361 = vperm.xlu0 %990, %v283_v47  }
  0x42   : > { %553 = vmatmul.bf16.gmra.mxu0 %v779_v51  ;;  %573 = vmatmul.bf16.gmra.mxu2 %v811_v52 }
  0x43   : > { %602 = vmatmul.bf16.gmra.mxu1 %v783_v53  ;;  %622 = vmatmul.bf16.gmra.mxu3 %v815_v54 }
  0x52   : > { %558 = vmatmul.bf16.gmra.mxu0 %v787_v1  ;;  %578 = vmatmul.bf16.gmra.mxu2 %v819_v2 }
  0x53   : > { %607 = vmatmul.bf16.gmra.mxu1 %v791_v3  ;;  %627 = vmatmul.bf16.gmra.mxu3 %v823_v4 }
  0x62   : > { %563 = vmatmul.bf16.gmra.mxu0 %v795_v13  ;;  %583 = vmatmul.bf16.gmra.mxu2 %v827_v14 }
  0x63   : > { %612 = vmatmul.bf16.gmra.mxu1 %v799_v15  ;;  %632 = vmatmul.bf16.gmra.mxu3 %v831_v16 }
  0x73   : > { %v307_v18 = vpop.permute.xlu2 %306 }
  0x7b   : > { %v1173_v21 = vpop.permute.xlu2 %311 }
  0x83   : > { %v327_v28 = vpop.permute.xlu2 %326 }
  0x87   : > { %v287_v17 = vpop.permute.xlu0 %286  ;;  %v297_v19 = vpop.permute.xlu1 %296 }
  0x8b   : > { %v342_v56 = vpop.permute.xlu2 %341 }
  0x8f   : > { %v292_v20 = vpop.permute.xlu0 %291  ;;  %v302_v23 = vpop.permute.xlu1 %301 }
  0x97   : > { %v1180_v27 = vpop.permute.xlu0 %316  ;;  %v1184_v36 = vpop.permute.xlu1 %321 }
  0x9f   : > { %v332_v38 = vpop.permute.xlu0 %331  ;;  %v337_v47 = vpop.permute.xlu1 %336 }
  0xa7   : > { %v347_v1 = vpop.permute.xlu0 %346  ;;  %v352_v10 = vpop.permute.xlu1 %351 }
  0xaf   : > { %v549_v22 = vpop.f32.mrf.mxu0 }
  0xb0   : > { %v550_v24 = vadd.f32 %v549_v22, %v287_v17  ;;  %v598_v25 = vpop.f32.mrf.mxu1 }
  0xb2   : > { %v599_v26 = vadd.f32 %v598_v25, %v550_v24 }
  0xb4   : > { %639 = vst.msk [vmem:[%s1178_s11] sm:$0xff] %vm638_vm0, %v599_v26 }
  0xb5   : > { %v569_v29 = vpop.f32.mrf.mxu2 }
  0xb6   : > { %v570_v30 = vadd.f32 %v569_v29, %v327_v28  ;;  %v618_v31 = vpop.f32.mrf.mxu3 }
  0xb7   : > { %v551_v32 = vpop.f32.mrf.mxu0 }
  0xb8   : > { %v619_v33 = vadd.f32 %v618_v31, %v570_v30  ;;  %v552_v34 = vadd.f32 %v551_v32, %v292_v20  ;;  %v600_v35 = vpop.f32.mrf.mxu1 }
  0xba   : > { %647 = vst.msk [vmem:[%s1178_s11 + $0x40] sm:$0xff] %vm638_vm0, %v619_v33  ;;  %v601_v37 = vadd.f32 %v600_v35, %v552_v34 }
  0xbc   : > { %640 = vst.msk [vmem:[%s1178_s11 + $0x8] sm:$0xff] %vm638_vm0, %v601_v37 }
  0xbd   : > { %v571_v39 = vpop.f32.mrf.mxu2 }
  0xbe   : > { %v572_v40 = vadd.f32 %v571_v39, %v332_v38  ;;  %v620_v41 = vpop.f32.mrf.mxu3 }
  0xbf   : > { %v554_v42 = vpop.f32.mrf.mxu0 }
  0xc0   : > { %v621_v43 = vadd.f32 %v620_v41, %v572_v40  ;;  %v555_v44 = vadd.f32 %v554_v42, %v297_v19  ;;  %v603_v45 = vpop.f32.mrf.mxu1  ;;  %v357_v19 = vpop.permute.xlu2 %356 }
  0xc2   : > { %648 = vst.msk [vmem:[%s1178_s11 + $0x48] sm:$0xff] %vm638_vm0, %v621_v43  ;;  %v604_v46 = vadd.f32 %v603_v45, %v555_v44 }
  0xc4   : > { %641 = vst.msk [vmem:[%s1178_s11 + $0x10] sm:$0xff] %vm638_vm0, %v604_v46 }
  0xc5   : > { %v574_v48 = vpop.f32.mrf.mxu2 }
  0xc6   : > { %v575_v49 = vadd.f32 %v574_v48, %v337_v47  ;;  %v623_v50 = vpop.f32.mrf.mxu3 }
  0xc7   : > { %v556_v51 = vpop.f32.mrf.mxu0 }
  0xc8   : > { %v624_v52 = vadd.f32 %v623_v50, %v575_v49  ;;  %v557_v53 = vadd.f32 %v556_v51, %v302_v23  ;;  %v605_v54 = vpop.f32.mrf.mxu1 }
  0xca   : > { %649 = vst.msk [vmem:[%s1178_s11 + $0x50] sm:$0xff] %vm638_vm0, %v624_v52  ;;  %v606_v55 = vadd.f32 %v605_v54, %v557_v53 }
  0xcc   : > { %642 = vst.msk [vmem:[%s1178_s11 + $0x18] sm:$0xff] %vm638_vm0, %v606_v55 }
  0xcd   : > { %v576_v57 = vpop.f32.mrf.mxu2 }
  0xce   : > { %v577_v58 = vadd.f32 %v576_v57, %v342_v56  ;;  %v625_v59 = vpop.f32.mrf.mxu3 }
  0xcf   : > { %v559_v60 = vpop.f32.mrf.mxu0 }
  0xd0   : > { %v626_v61 = vadd.f32 %v625_v59, %v577_v58  ;;  %v560_v62 = vadd.f32 %v559_v60, %v307_v18  ;;  %v608_v63 = vpop.f32.mrf.mxu1 }
  0xd2   : > { %650 = vst.msk [vmem:[%s1178_s11 + $0x58] sm:$0xff] %vm638_vm0, %v626_v61  ;;  %v609_v0 = vadd.f32 %v608_v63, %v560_v62 }
  0xd4   : > { %643 = vst.msk [vmem:[%s1178_s11 + $0x20] sm:$0xff] %vm638_vm0, %v609_v0 }
  0xd5   : > { %v579_v2 = vpop.f32.mrf.mxu2 }
  0xd6   : > { %v580_v3 = vadd.f32 %v579_v2, %v347_v1  ;;  %v628_v4 = vpop.f32.mrf.mxu3 }
  0xd7   : > { %v561_v5 = vpop.f32.mrf.mxu0 }
  0xd8   : > { %v629_v6 = vadd.f32 %v628_v4, %v580_v3  ;;  %v562_v7 = vadd.f32 %v561_v5, %v1173_v21  ;;  %v610_v8 = vpop.f32.mrf.mxu1 }
  0xda   : > { %651 = vst.msk [vmem:[%s1178_s11 + $0x60] sm:$0xff] %vm638_vm0, %v629_v6  ;;  %v611_v9 = vadd.f32 %v610_v8, %v562_v7 }
  0xdc   : > { %644 = vst.msk [vmem:[%s1178_s11 + $0x28] sm:$0xff] %vm638_vm0, %v611_v9 }
  0xdd   : > { %v581_v11 = vpop.f32.mrf.mxu2 }
  0xde   : > { %v582_v12 = vadd.f32 %v581_v11, %v352_v10  ;;  %v630_v13 = vpop.f32.mrf.mxu3 }
  0xdf   : > { %v564_v14 = vpop.f32.mrf.mxu0 }
  0xe0   : > { %v631_v15 = vadd.f32 %v630_v13, %v582_v12  ;;  %v565_v16 = vadd.f32 %v564_v14, %v1180_v27  ;;  %v613_v17 = vpop.f32.mrf.mxu1  ;;  %v362_v27 = vpop.permute.xlu0 %361 }
  0xe2   : > { %652 = vst.msk [vmem:[%s1178_s11 + $0x68] sm:$0xff] %vm638_vm0, %v631_v15  ;;  %v614_v18 = vadd.f32 %v613_v17, %v565_v16 }
  0xe4   : > { %645 = vst.msk [vmem:[%s1178_s11 + $0x30] sm:$0xff] %vm638_vm0, %v614_v18 }
  0xe5   : > { %v584_v20 = vpop.f32.mrf.mxu2 }
  0xe6   : > { %v585_v21 = vadd.f32 %v584_v20, %v357_v19  ;;  %v633_v22 = vpop.f32.mrf.mxu3 }
  0xe7   : > { %v566_v23 = vpop.f32.mrf.mxu0 }
  0xe8   : > { %v634_v24 = vadd.f32 %v633_v22, %v585_v21  ;;  %v567_v25 = vadd.f32 %v566_v23, %v1184_v36  ;;  %v615_v26 = vpop.f32.mrf.mxu1 }
  0xea   : > { %653 = vst.msk [vmem:[%s1178_s11 + $0x70] sm:$0xff] %vm638_vm0, %v634_v24  ;;  %v616_v28 = vadd.f32 %v615_v26, %v567_v25 }
  0xec   : > { %646 = vst.msk [vmem:[%s1178_s11 + $0x38] sm:$0xff] %vm638_vm0, %v616_v28 }
  0xed   : > { %v586_v29 = vpop.f32.mrf.mxu2 }
  0xee   : > { %v587_v30 = vadd.f32 %v586_v29, %v362_v27  ;;  %v635_v31 = vpop.f32.mrf.mxu3 }
  0xf0   : > { %v636_v32 = vadd.f32 %v635_v31, %v587_v30 }
  0xf2   : > { %654 = vst.msk [vmem:[%s1178_s11 + $0x78] sm:$0xff] %vm638_vm0, %v636_v32 }
  0xf3 PF: > { %s13_s16 = sadd.s32 1, %s1031_s16   ;;  %s1238_s12 = smov %s1023_s14 }
  0xf4   : > { %p10_p8 = scmp.ge.s32.totalorder %s13_s16, 6   ;;  %s1239_s13 = smov %s1027_s15 }
  0xf5   : > { %s1240_s14 = smov %s1243_s17  ;;  %s1241_s15 = smov %s1247_s18 }
  0xf6   :  { %12 = sbr.rel (!%p10_p8) target bundleno = 3 (0x3), region = 66 }

</bundles_post_ra>
